<compile_context>
chip_gen: v7x
topology: tpu7x:2x2x1
jax: 0.10.0
libtpu: 0.0.40
codegen_flags: <defaults>
</compile_context>

<pallas_src>
import jax
import jax.numpy as jnp
from jax.experimental import pallas as pl
from jax.experimental.pallas import tpu as pltpu


def _pair(v):
    return (v, v) if isinstance(v, int) else tuple(v)


def _round_up(x, m):
    return ((x + m - 1) // m) * m


# ---------------------------------------------------------------------------
# Pallas kernel: grouped, tiled MXU matmul, f32 accumulator, fused epilogue.
#   grid = (groups, M/tm, Np/tn, Kp/tk)       (reduction axis K last)
#   A: (g, M, Kp)  bf16    block (Squeezed, tm, tk)
#   B: (g, Kp, Np) bf16    block (Squeezed, tk, tn)
#   scale/shift/slope: (g, 1, Np) f32  block (Squeezed, 1, tn)
#   O: (g, M, Np)  bf16    block (Squeezed, tm, tn)
# ---------------------------------------------------------------------------
def _conv_mm_kernel(a_ref, b_ref, scale_ref, shift_ref, slope_ref, o_ref,
                    acc_ref):
    k = pl.program_id(3)

    @pl.when(k == 0)
    def _():
        acc_ref[...] = jnp.zeros_like(acc_ref)

    acc_ref[...] += jnp.dot(a_ref[...], b_ref[...],
                            preferred_element_type=jnp.float32)

    @pl.when(k == pl.num_programs(3) - 1)
    def _():
        # BN scale + (conv bias + BN shift) folded epilogue, then PReLU
        y = acc_ref[...] * scale_ref[...] + shift_ref[...]
        y = jnp.where(y >= 0.0, y, y * slope_ref[...])     # slope=1 -> identity
        o_ref[...] = y.astype(o_ref.dtype)


def _grouped_matmul_bn_prelu(a, b, scale, shift, slope):
    """a:(g,M,K) bf16, b:(g,K,Np) bf16, scale/shift/slope:(g,1,Np) f32
       -> (g,M,Np) bf16."""
    g, M, K = a.shape
    _, _, npad = b.shape

    # --- K padding: lane-align the reduction dim to 128 ---
    kp = _round_up(K, 128)
    if kp != K:                       # zero rows contribute 0 to the dot
        a = jnp.pad(a, ((0, 0), (0, 0), (0, kp - K)))
        b = jnp.pad(b, ((0, 0), (0, kp - K), (0, 0)))
        K = kp
    if K <= 1024:
        tk = K
    else:
        tk = 128
        for cand in (1024, 896, 768, 640, 512, 384, 256, 128):
            if K % cand == 0:
                tk = cand
                break

    # --- N tile: largest lane-dense divisor of padded Cout ---
    tn = 128
    for cand in (512, 256, 128):
        if npad % cand == 0:
            tn = cand
            break

    # --- M tile: large (fewer grid steps / B refetches), bf16-sublane aligned
    tm = min(1024, _round_up(M, 16))
    # v7x has 2 TensorCores: ensure >= 2 parallel grid blocks for small layers.
    if g * pl.cdiv(M, tm) * (npad // tn) < 2 and M >= 32:
        tm = _round_up(-(-M // 2), 16)

    grid = (g, pl.cdiv(M, tm), npad // tn, K // tk)

    flops = 2 * g * M * K * npad
    bytes_accessed = int(a.size * a.dtype.itemsize
                         + b.size * b.dtype.itemsize
                         + g * M * npad * 2)

    out = pl.pallas_call(
        _conv_mm_kernel,
        out_shape=jax.ShapeDtypeStruct((g, M, npad), jnp.bfloat16),
        grid_spec=pltpu.PrefetchScalarGridSpec(
            num_scalar_prefetch=0,
            grid=grid,
            in_specs=[
                pl.BlockSpec((pl.Squeezed(), tm, tk),
                             lambda gi, mi, ni, ki: (gi, mi, ki)),
                pl.BlockSpec((pl.Squeezed(), tk, tn),
                             lambda gi, mi, ni, ki: (gi, ki, ni)),
                pl.BlockSpec((pl.Squeezed(), 1, tn),
                             lambda gi, mi, ni, ki: (gi, 0, ni)),
                pl.BlockSpec((pl.Squeezed(), 1, tn),
                             lambda gi, mi, ni, ki: (gi, 0, ni)),
                pl.BlockSpec((pl.Squeezed(), 1, tn),
                             lambda gi, mi, ni, ki: (gi, 0, ni)),
            ],
            out_specs=pl.BlockSpec((pl.Squeezed(), tm, tn),
                                   lambda gi, mi, ni, ki: (gi, mi, ni)),
            scratch_shapes=[pltpu.VMEM((tm, tn), jnp.float32)],
        ),
        compiler_params=pltpu.CompilerParams(
            dimension_semantics=("parallel", "parallel", "parallel",
                                 "arbitrary"),
            vmem_limit_bytes=48 * 1024 * 1024,
        ),
        cost_estimate=pl.CostEstimate(flops=flops, transcendentals=0,
                                      bytes_accessed=bytes_accessed),
    )(a, b, scale, shift, slope)
    return out


# ---------------------------------------------------------------------------
# Glue: grouped im2col in bf16 (pure data movement, stays in plain JAX).
# ---------------------------------------------------------------------------
def _im2col_grouped(x, kh, kw, stride, padding, dilation, groups):
    N, C, H, W = x.shape
    sh, sw = stride
    ph, pw = padding
    dh, dw = dilation
    OH = (H + 2 * ph - dh * (kh - 1) - 1) // sh + 1
    OW = (W + 2 * pw - dw * (kw - 1) - 1) // sw + 1
    xp = jnp.pad(x, ((0, 0), (0, 0), (ph, ph), (pw, pw)))
    cols = []
    for i in range(kh):
        for j in range(kw):
            patch = xp[:, :,
                       i * dh: i * dh + sh * (OH - 1) + 1: sh,
                       j * dw: j * dw + sw * (OW - 1) + 1: sw]
            cols.append(patch)                         # (N, C, OH, OW)
    col = jnp.stack(cols, axis=2)                      # (N, C, kh*kw, OH, OW)
    cin_g = C // groups
    col = col.reshape(N, groups, cin_g * kh * kw, OH, OW)
    # rows in (N, OH, OW) order, columns ordered (c, ki, kj) within each group
    a = col.transpose(1, 0, 3, 4, 2).reshape(groups, N * OH * OW,
                                             cin_g * kh * kw)
    return a, OH, OW


# ---------------------------------------------------------------------------
# Conv module (JAX mirror of the PyTorch module, deterministic init)
# ---------------------------------------------------------------------------
class Conv:
    def __init__(self, nIn, nOut, kSize, stride, padding, dilation=(1, 1),
                 groups=1, bn_acti=False, bias=False, *, key):
        self.nIn, self.nOut = nIn, nOut
        self.kh, self.kw = _pair(kSize)
        self.stride = _pair(stride)
        self.padding = _pair(padding)
        self.dilation = _pair(dilation)
        self.groups = groups
        self.bn_acti = bn_acti
        self.use_bias = bias
        self.eps = 1e-3                                 # BatchNorm2d(eps=0.001)

        kw_, kb_, kg_, kbeta_, km_, kv_ = jax.random.split(key, 6)
        fan_in = (nIn // groups) * self.kh * self.kw
        # Conv2d weight: (Cout, Cin/groups, kh, kw), kaiming-uniform-like scale
        self.weight = (jax.random.normal(
            kw_, (nOut, nIn // groups, self.kh, self.kw), jnp.float32)
            * (1.0 / jnp.sqrt(fan_in)))
        self.bias = (jax.random.normal(kb_, (nOut,), jnp.float32) * 0.1
                     if bias else jnp.zeros((nOut,), jnp.float32))

        if bn_acti:
            # TODO(synk): BatchNorm is implemented in inference (eval) mode with
            # fixed running stats; training-mode batch-statistic computation is
            # not reproduced in the kernel.
            self.bn_gamma = 1.0 + 0.1 * jax.random.normal(kg_, (nOut,), jnp.float32)
            self.bn_beta = 0.1 * jax.random.normal(kbeta_, (nOut,), jnp.float32)
            self.bn_mean = 0.1 * jax.random.normal(km_, (nOut,), jnp.float32)
            self.bn_var = 1.0 + 0.5 * jax.random.uniform(kv_, (nOut,), jnp.float32)
            self.prelu_slope = jnp.full((nOut,), 0.25, jnp.float32)  # PReLU default
        else:
            self.bn_gamma = self.bn_beta = self.bn_mean = self.bn_var = None
            self.prelu_slope = None

    def _folded_params(self):
        """Per-channel (scale, shift, slope) for the f32 epilogue."""
        if self.bn_acti:
            scale = self.bn_gamma / jnp.sqrt(self.bn_var + self.eps)
            shift = (self.bias - self.bn_mean) * scale + self.bn_beta
            slope = self.prelu_slope
        else:
            scale = jnp.ones((self.nOut,), jnp.float32)
            shift = self.bias
            slope = jnp.ones((self.nOut,), jnp.float32)  # identity PReLU
        return scale, shift, slope

    def __call__(self, x):
        N = x.shape[0]
        g = self.groups
        cin_g, cout_g = self.nIn // g, self.nOut // g
        scale, shift, slope = self._folded_params()

        # bf16 im2col patches for all groups at once: (g, M, Kg) (built once
        # in bf16 -> no separate post-hoc cast pass over the expanded tensor)
        a, OH, OW = _im2col_grouped(x.astype(jnp.bfloat16), self.kh, self.kw,
                                    self.stride, self.padding, self.dilation, g)

        # weights (Cout, cin_g, kh, kw) -> (g, Kg, cout_g) bf16 (scale applied
        # in the f32 epilogue, not folded into the bf16 weights)
        w = self.weight.reshape(g, cout_g, cin_g * self.kh * self.kw)
        b = w.transpose(0, 2, 1).astype(jnp.bfloat16)            # (g, Kg, cout_g)

        # lane-dense output: pad cout_g to a multiple of 128
        cout_pad = _round_up(cout_g, 128)
        sc = scale.reshape(g, 1, cout_g)
        sh = shift.reshape(g, 1, cout_g)
        sl = slope.reshape(g, 1, cout_g)
        if cout_pad != cout_g:
            b = jnp.pad(b, ((0, 0), (0, 0), (0, cout_pad - cout_g)))
            sc = jnp.pad(sc, ((0, 0), (0, 0), (0, cout_pad - cout_g)),
                         constant_values=1.0)
            sh = jnp.pad(sh, ((0, 0), (0, 0), (0, cout_pad - cout_g)))
            sl = jnp.pad(sl, ((0, 0), (0, 0), (0, cout_pad - cout_g)),
                         constant_values=1.0)

        # bf16 MXU operands, f32 accumulation + epilogue, bf16 output
        y = _grouped_matmul_bn_prelu(a, b, sc, sh, sl)

        # (g, M, cout_pad) -> NCHW ; slice/reshape/transpose stay in bf16,
        # single f32 cast at the end preserves the module's output dtype.
        y = y[:, :, :cout_g].reshape(g, N, OH, OW, cout_g)
        y = y.transpose(1, 0, 4, 2, 3).reshape(N, g * cout_g, OH, OW)
        return y.astype(jnp.float32)

    # pure-JAX reference (for correctness check only)
    def reference(self, x):
        y = jax.lax.conv_general_dilated(
            x, self.weight, window_strides=self.stride,
            padding=[(self.padding[0], self.padding[0]),
                     (self.padding[1], self.padding[1])],
            rhs_dilation=self.dilation,
            dimension_numbers=('NCHW', 'OIHW', 'NCHW'),
            feature_group_count=self.groups)
        y = y + self.bias[None, :, None, None]
        if self.bn_acti:
            y = (y - self.bn_mean[None, :, None, None]) / jnp.sqrt(
                self.bn_var[None, :, None, None] + self.eps)
            y = y * self.bn_gamma[None, :, None, None] + self.bn_beta[None, :, None, None]
            a = self.prelu_slope[None, :, None, None]
            y = jnp.where(y >= 0, y, a * y)
        return y


if __name__ == "__main__":
    key = jax.random.PRNGKey(0)
    kx, kp1, kp2 = jax.random.split(key, 3)

    N, Cin, H, W = 2, 4, 16, 16
    Cout = 8
    x = jax.random.normal(kx, (N, Cin, H, W), jnp.float32)

    # Test 1: standard conv + BN + PReLU
    conv = Conv(Cin, Cout, kSize=3, stride=1, padding=1, dilation=(1, 1),
                groups=1, bn_acti=True, bias=False, key=kp1)
    y = jax.block_until_ready(conv(x))
    y_ref = conv.reference(x)
    assert y.shape == (N, Cout, H, W), y.shape
    # bf16 MXU operands / bf16 output -> looser tolerance than f32-only
    assert jnp.allclose(y, y_ref, atol=5e-2, rtol=5e-2), \
        float(jnp.max(jnp.abs(y - y_ref)))

    # Test 2: grouped, strided conv with bias, no BN/PReLU
    conv2 = Conv(Cin, Cout, kSize=3, stride=2, padding=1, dilation=(1, 1),
                 groups=2, bn_acti=False, bias=True, key=kp2)
    y2 = jax.block_until_ready(conv2(x))
    y2_ref = conv2.reference(x)
    assert y2.shape == (N, Cout, H // 2, W // 2), y2.shape
    assert jnp.allclose(y2, y2_ref, atol=5e-2, rtol=5e-2), \
        float(jnp.max(jnp.abs(y2 - y2_ref)))

    print("KERNEL_OK")
</pallas_src>

<mosaic_0001>
module attributes {stable_mosaic.version = 11 : i64} {
  func.func @_conv_mm_kernel(%arg0: i32, %arg1: i32, %arg2: i32, %arg3: i32, %arg4: memref<1x256x128xbf16, #tpu.memory_space<vmem>>, %arg5: memref<1x128x128xbf16, #tpu.memory_space<vmem>>, %arg6: memref<1x1x128xf32, #tpu.memory_space<vmem>>, %arg7: memref<1x1x128xf32, #tpu.memory_space<vmem>>, %arg8: memref<1x1x128xf32, #tpu.memory_space<vmem>>, %arg9: memref<1x256x128xbf16, #tpu.memory_space<vmem>>, %arg10: memref<256x128xf32, #tpu.memory_space<vmem>>) attributes {dimension_semantics = [#tpu.dimension_semantics<parallel>, #tpu.dimension_semantics<parallel>, #tpu.dimension_semantics<parallel>, #tpu.dimension_semantics<arbitrary>], iteration_bounds = array<i64: 1, 2, 1, 1>, scalar_prefetch = 0 : i64, scratch_operands = 1 : i64, tpu.core_type = #tpu.core_type<tc>, window_params = [{transform_indices = @transform_0, window_bounds = array<i64: 1, 256, 128>}, {transform_indices = @transform_1, window_bounds = array<i64: 1, 128, 128>}, {transform_indices = @transform_2, window_bounds = array<i64: 1, 1, 128>}, {transform_indices = @transform_3, window_bounds = array<i64: 1, 1, 128>}, {transform_indices = @transform_4, window_bounds = array<i64: 1, 1, 128>}, {transform_indices = @transform_5, window_bounds = array<i64: 1, 256, 128>}]} {
    %c0_i32 = arith.constant 0 : i32
    %0 = arith.cmpi eq, %arg3, %c0_i32 : i32
    %1 = arith.extui %0 : i1 to i32
    %c0_i32_0 = arith.constant 0 : i32
    %2 = arith.cmpi ne, %1, %c0_i32_0 : i32
    scf.if %2 {
      %cst_12 = arith.constant 0.000000e+00 : f32
      %14 = vector.broadcast %cst_12 : f32 to vector<256x128xf32>
      %c0_13 = arith.constant 0 : index
      %c0_14 = arith.constant 0 : index
      %15 = vector.load %arg10[%c0_13, %c0_14] : memref<256x128xf32, #tpu.memory_space<vmem>>, vector<256x128xf32>
      tpu.vector_store %arg10[%c0_13, %c0_14], %14 {strides = array<i32>} : memref<256x128xf32, #tpu.memory_space<vmem>>, vector<256x128xf32>,
    } else {
    }
    %c0 = arith.constant 0 : index
    %c0_1 = arith.constant 0 : index
    %3 = vector.load %arg10[%c0, %c0_1] : memref<256x128xf32, #tpu.memory_space<vmem>>, vector<256x128xf32>
    %c0_2 = arith.constant 0 : index
    %c0_3 = arith.constant 0 : index
    %c0_4 = arith.constant 0 : index
    %4 = vector.load %arg4[%c0_2, %c0_3, %c0_4] : memref<1x256x128xbf16, #tpu.memory_space<vmem>>, vector<1x256x128xbf16>
    %5 = vector.shape_cast %4 : vector<1x256x128xbf16> to vector<256x128xbf16>
    %c0_5 = arith.constant 0 : index
    %c0_6 = arith.constant 0 : index
    %c0_7 = arith.constant 0 : index
    %6 = vector.load %arg5[%c0_5, %c0_6, %c0_7] : memref<1x128x128xbf16, #tpu.memory_space<vmem>>, vector<1x128x128xbf16>
    %7 = vector.shape_cast %6 : vector<1x128x128xbf16> to vector<128x128xbf16>
    %cst = arith.constant dense<0.000000e+00> : vector<256x128xf32>
    %8 = tpu.matmul %5, %7, %cst {dimension_numbers = #tpu.dot_dimension_numbers<[1], [0], [0], [1], [0, 0, 1, 1], [], []>} : vector<256x128xbf16>, vector<128x128xbf16>, vector<256x128xf32> -> vector<256x128xf32>
    %9 = arith.addf %3, %8 : vector<256x128xf32>
    %c0_8 = arith.constant 0 : index
    %c0_9 = arith.constant 0 : index
    %10 = vector.load %arg10[%c0_8, %c0_9] : memref<256x128xf32, #tpu.memory_space<vmem>>, vector<256x128xf32>
    tpu.vector_store %arg10[%c0_8, %c0_9], %9 {strides = array<i32>} : memref<256x128xf32, #tpu.memory_space<vmem>>, vector<256x128xf32>,
    %c0_i32_10 = arith.constant 0 : i32
    %11 = arith.cmpi eq, %arg3, %c0_i32_10 : i32
    %12 = arith.extui %11 : i1 to i32
    %c0_i32_11 = arith.constant 0 : i32
    %13 = arith.cmpi ne, %12, %c0_i32_11 : i32
    scf.if %13 {
      %c0_12 = arith.constant 0 : index
      %c0_13 = arith.constant 0 : index
      %14 = vector.load %arg10[%c0_12, %c0_13] : memref<256x128xf32, #tpu.memory_space<vmem>>, vector<256x128xf32>
      %c0_14 = arith.constant 0 : index
      %c0_15 = arith.constant 0 : index
      %c0_16 = arith.constant 0 : index
      %15 = vector.load %arg6[%c0_14, %c0_15, %c0_16] : memref<1x1x128xf32, #tpu.memory_space<vmem>>, vector<1x1x128xf32>
      %16 = vector.shape_cast %15 : vector<1x1x128xf32> to vector<1x128xf32>
      %17 = vector.broadcast %16 : vector<1x128xf32> to vector<256x128xf32>
      %18 = arith.mulf %14, %17 : vector<256x128xf32>
      %c0_17 = arith.constant 0 : index
      %c0_18 = arith.constant 0 : index
      %c0_19 = arith.constant 0 : index
      %19 = vector.load %arg7[%c0_17, %c0_18, %c0_19] : memref<1x1x128xf32, #tpu.memory_space<vmem>>, vector<1x1x128xf32>
      %20 = vector.shape_cast %19 : vector<1x1x128xf32> to vector<1x128xf32>
      %21 = vector.broadcast %20 : vector<1x128xf32> to vector<256x128xf32>
      %22 = arith.addf %18, %21 : vector<256x128xf32>
      %cst_20 = arith.constant 0.000000e+00 : f32
      %23 = vector.broadcast %cst_20 : f32 to vector<256x128xf32>
      %24 = arith.cmpf oge, %22, %23 : vector<256x128xf32>
      %c0_21 = arith.constant 0 : index
      %c0_22 = arith.constant 0 : index
      %c0_23 = arith.constant 0 : index
      %25 = vector.load %arg8[%c0_21, %c0_22, %c0_23] : memref<1x1x128xf32, #tpu.memory_space<vmem>>, vector<1x1x128xf32>
      %26 = vector.shape_cast %25 : vector<1x1x128xf32> to vector<1x128xf32>
      %27 = vector.broadcast %26 : vector<1x128xf32> to vector<256x128xf32>
      %28 = arith.mulf %22, %27 : vector<256x128xf32>
      %29 = arith.select %24, %22, %28 : vector<256x128xi1>, vector<256x128xf32>
      %30 = arith.truncf %29 : vector<256x128xf32> to vector<256x128xbf16>
      %c0_24 = arith.constant 0 : index
      %c0_25 = arith.constant 0 : index
      %c0_26 = arith.constant 0 : index
      %31 = vector.load %arg9[%c0_24, %c0_25, %c0_26] : memref<1x256x128xbf16, #tpu.memory_space<vmem>>, vector<1x256x128xbf16>
      %32 = vector.shape_cast %31 : vector<1x256x128xbf16> to vector<256x128xbf16>
      %33 = vector.shape_cast %30 : vector<256x128xbf16> to vector<1x256x128xbf16>
      tpu.vector_store %arg9[%c0_24, %c0_25, %c0_26], %33 {strides = array<i32>} : memref<1x256x128xbf16, #tpu.memory_space<vmem>>, vector<1x256x128xbf16>,
    } else {
    }
    return
  }
  func.func @transform_0(%arg0: i32, %arg1: i32, %arg2: i32, %arg3: i32) -> (i32, i32, i32) {
    %c0_i32 = arith.constant 0 : i32
    return %arg0, %arg1, %arg3 : i32, i32, i32
  }
  func.func @transform_1(%arg0: i32, %arg1: i32, %arg2: i32, %arg3: i32) -> (i32, i32, i32) {
    %c0_i32 = arith.constant 0 : i32
    return %arg0, %arg3, %arg2 : i32, i32, i32
  }
  func.func @transform_2(%arg0: i32, %arg1: i32, %arg2: i32, %arg3: i32) -> (i32, i32, i32) {
    %c0_i32 = arith.constant 0 : i32
    %c0_i32_0 = arith.constant 0 : i32
    return %arg0, %c0_i32, %arg2 : i32, i32, i32
  }
  func.func @transform_3(%arg0: i32, %arg1: i32, %arg2: i32, %arg3: i32) -> (i32, i32, i32) {
    %c0_i32 = arith.constant 0 : i32
    %c0_i32_0 = arith.constant 0 : i32
    return %arg0, %c0_i32, %arg2 : i32, i32, i32
  }
  func.func @transform_4(%arg0: i32, %arg1: i32, %arg2: i32, %arg3: i32) -> (i32, i32, i32) {
    %c0_i32 = arith.constant 0 : i32
    %c0_i32_0 = arith.constant 0 : i32
    return %arg0, %c0_i32, %arg2 : i32, i32, i32
  }
  func.func @transform_5(%arg0: i32, %arg1: i32, %arg2: i32, %arg3: i32) -> (i32, i32, i32) {
    %c0_i32 = arith.constant 0 : i32
    return %arg0, %arg1, %arg2 : i32, i32, i32
  }
}

</mosaic_0001>

<bundles_post_ra>
// kernel: tpu_custom_call.1
= control target key start
LH: loop header
LB: loop body
LE: loop exit
PB: predicated region body
PF: predicated region fallthrough
CT: control target
= control target key end

     0   :  { %10 = vsyncpa [#allocation4], 0  ;;  %s2383_s0 = inlined_call_operand.hbm [shape: bf16[1,512,128], index: 0, kind: input, shape index: {}]   ;;  %s2384_s1 = inlined_call_operand.hbm [shape: bf16[1,128,128], index: 1, kind: input, shape index: {}]   ;;  %s2385_s2 = inlined_call_operand.vmem [shape: f32[1,1,128], index: 2, kind: input, shape index: {}]   ;;  %s2386_s3 = inlined_call_operand.vmem [shape: f32[1,1,128], index: 3, kind: input, shape index: {}]   ;;  %s2387_s4 = inlined_call_operand.vmem [shape: f32[1,1,128], index: 4, kind: input, shape index: {}]   ;;  %s2388_s5 = inlined_call_operand.hbm [shape: bf16[1,512,128], index: 5, kind: output, shape index: {}]  }
   0x1   :  { %12 = vsyncpa [#allocation4 + $0x1], 0 }
   0x2   :  { %13 = vsyncpa [#allocation7], 0 }
   0x3   :  { %14 = vsyncpa [#allocation5], 0 }
   0x4   :  { %16 = vsyncpa [#allocation5 + $0x1], 0  ;;  %s2003_s18 = smov 0   ;;  %s2005_s19 = smov 0  }
   0x5   :  { %s2007_s20 = smov 0   ;;  %s2009_s21 = smov 0  }
   0x6   :  { %s2011_s22 = smov 0   ;;  %s2013_s23 = smov 0  }
   0x7 LB: > { %s1423_s24 = sadd.s32 4294967295, %s1964_s23   ;;  %s1424_s25 = sadd.s32 4294967294, %s1964_s23   ;;  %s1964_s23 = sphi %s2013_s23, %s22_s23   ;;  %s1960_s22 = sphi %s2011_s22, %s2414_s22   ;;  %s1956_s21 = sphi %s2009_s21, %s2413_s21   ;;  %s1952_s20 = sphi %s2007_s20, %s2412_s20   ;;  %s1948_s19 = sphi %s2005_s19, %s2411_s19   ;;  %s1944_s18 = sphi %s2003_s18, %s2410_s18  }
   0x8   : > { %p72_p0 = scmp.ne.s32.totalorder %s1948_s19, %s1944_s18  ;;  %p2037_p1 = scmp.eq.s32.totalorder %s1423_s24, 0 }
   0x9   : > { %p2041_p2 = scmp.eq.s32.totalorder %s1423_s24, 1  ;;  %p220_p3 = scmp.eq.s32.totalorder %s1424_s25, 1 }
   0xa   : > { %s2394_s26 = scalar_select %p2037_p1, 1, 0 }
   0xb   : > { %s2395_s27 = scalar_select %p2041_p2, 1, 0 }
   0xc   : > { %p2047_p4 = por %p2037_p1, %p72_p0  ;;  %p1425_p5 = scmp.ge.s32.totalorder %s1964_s23, 1 }
   0xd   : > { %p2052_p6 = por %p220_p3, %p72_p0  ;;  %p227_p7 = scmp.lt.s32.totalorder %s1964_s23, 3 }
   0xe   : > { %s2396_s28 = scalar_select %p2047_p4, 1, 0 }
   0xf   : > { %s2397_s29 = scalar_select %p2052_p6, 1, 0 }
  0x10   : > { %p2057_p8 = pnand %p1425_p5, %p227_p7  ;;  %s1966_s6 = smov [#allocation6]  }
  0x11   : > { %s245_s7 = sshll.u32 %s1966_s6, 4  ;;  %s44_s9 = sadd.s32 1, %s1960_s22  ;;  %s246_s7 = int_to_ptr.vmem [resolvable:$true] %s245_s7 }
  0x12   : > { %s2398_s30 = scalar_select %p2057_p8, 1, 0 }
  0x13   : > { %p1727_p9 = pneg %p2057_p8  ;;  %s1820_s12 = scalar_lea.hbm %s2384_s1, 1024 }
  0x14   : > { %p1821_p12 = scmp.ne.s32.totalorder %s2384_s1, %s1820_s12  ;;  %p1827_p5 = scmp.lt.u32.totalorder %s1820_s12, %s2384_s1 }
  0x15   : > { %p2066_p11 = pnand %p1727_p9, %p2037_p1 }
  0x17   : > { %p1822_p13 = pneg %p2066_p11 }
  0x19   : > { %p1823_p0 = pnand %p1822_p13, %p1821_p12 }
  0x1b   : > { %p1824_p3 = pneg %p1823_p0 }
  0x1d   : > { %p1829_p7 = pnand %p1827_p5, %p1824_p3 }
  0x1f   : > { %1832 = shalt.err (!%p1829_p7)
}
  0x20   : > { %s1833_s17 = scalar_lea.vmem %s246_s7, 1024  ;;  %p1841_p1 = scmp.lt.s32.totalorder %s246_s7, %s246_s7 }
  0x21   : > { %p1834_p9 = scmp.ne.s32.totalorder %s246_s7, %s1833_s17  ;;  %p1842_p4 = scmp.lt.s32.totalorder %s1833_s17, %s1833_s17 }
  0x23   : > { %p1836_p10 = pnand %p1834_p9, %p1822_p13  ;;  %p1843_p8 = por %p1842_p4, %p1841_p1 }
  0x25   : > { %p1837_p6 = pneg %p1836_p10 }
  0x27   : > { %p1844_p2 = pnand %p1843_p8, %p1837_p6 }
  0x29   : > { %1847 = shalt.err (!%p1844_p2)
}
  0x2a   : > { %s2393_s24 = smov 64   ;;  %s1968_s25 = smov 4  }
  0x2b   : > { %1730 = dma.hbm_to_vmem [thread:$0]  (!%p2066_p11), %s2384_s1, 1024, %s246_s7, [#allocation7], %s2393_s24, %s2393_s24, %s1968_s25  }
  0x2c   : > { %p46_p1 = scmp.ge.s32.totalorder %s44_s9, 2  ;;  %s59_s11 = sadd.s32 1, %s1952_s20 }
  0x2d   : > { %p66_p2 = scmp.ne.s32.totalorder %s1952_s20, %s1948_s19  ;;  %p67_p4 = scmp.eq.s32.totalorder %s1964_s23, 0 }
  0x2e   : > { %s2416_s9 = smov (%p46_p1, %s44_s9), 0  ;;  %p2401_p8 = scmp.ne.s32.totalorder %s2395_s27, 0 }
  0x2f   : > { %p2096_p6 = por %p67_p4, %p66_p2  ;;  %s53_s13 = ssub.s32 %s1960_s22, %s2416_s9 }
  0x30   : > { %p2102_p10 = por %p2401_p8, %p66_p2  ;;  %p1740_p12 = scmp.lt.s32.totalorder %s1964_s23, 2 }
  0x31   : > { %p57_p11 = scmp.eq.s32.totalorder %s53_s13, 0  ;;  %s286_s7 = sand.u32 1, %s1952_s20  }
  0x32   : > { %s1431_s14 = sshll.u32 %s286_s7, 7  ;;  %s1502_s16 = sshll.u32 %s1960_s22, 11 }
  0x33   : > { %s2111_s15 = scalar_select %p57_p11, %s1952_s20, %s59_s11  }
  0x34   : > { %s2117_s10 = scalar_lea.hbm %s2383_s0, %s1502_s16  ;;  %s290_s27 = scalar_lea.vmem [#allocation3], %s1431_s14 }
  0x35   : > { %s300_s24 = sshll.u32 %s290_s27, 4  ;;  %p2123_p13 = pnand %p1740_p12, %p2096_p6  ;;  %s2119_s24 = int_to_ptr.vmem [resolvable:$true] %s300_s24 }
  0x36   : > { %s2127_s11 = scalar_lea.sflag [#allocation4], %s286_s7  ;;  %s1848_s17 = scalar_lea.hbm %s2117_s10, 2048 }
  0x37   : > { %p1849_p0 = scmp.ne.s32.totalorder %s2117_s10, %s1848_s17  ;;  %p1850_p3 = pneg %p2123_p13 }
  0x38   : > { %s1853_s12 = scalar_lea.hbm %s2383_s0, 4096  ;;  %p1854_p9 = scmp.lt.u32.totalorder %s2117_s10, %s2383_s0 }
  0x39   : > { %p1851_p5 = pnand %p1850_p3, %p1849_p0  ;;  %p1855_p1 = scmp.lt.u32.totalorder %s1853_s12, %s1848_s17 }
  0x3a   : > { %p1857_p4 = scmp.lt.u32.totalorder %s1848_s17, %s2117_s10 }
  0x3b   : > { %p1852_p7 = pneg %p1851_p5  ;;  %p1856_p2 = por %p1855_p1, %p1854_p9 }
  0x3d   : > { %p1858_p6 = por %p1857_p4, %p1856_p2 }
  0x3f   : > { %p1859_p8 = pnand %p1858_p6, %p1852_p7 }
  0x41   : > { %1862 = shalt.err (!%p1859_p8)
}
  0x42   : > { %s1863_s7 = scalar_lea.vmem %s2119_s24, 2048  ;;  %s1969_s14 = smov [#allocation3]  }
  0x43   : > { %p1864_p12 = scmp.ne.s32.totalorder %s2119_s24, %s1863_s7  ;;  %s1868_s16 = sshll.u32 %s1969_s14, 4  ;;  %s1869_s16 = int_to_ptr.vmem [resolvable:$false] %s1868_s16 }
  0x44   : > { %s1870_s6 = scalar_lea.vmem %s1869_s16, 4096  ;;  %p1871_p5 = scmp.lt.s32.totalorder %s2119_s24, %s1869_s16 }
  0x45   : > { %p1866_p11 = pnand %p1864_p12, %p1850_p3  ;;  %p1872_p9 = scmp.lt.s32.totalorder %s1870_s6, %s1863_s7 }
  0x47   : > { %p1867_p0 = pneg %p1866_p11  ;;  %p1873_p1 = por %p1872_p9, %p1871_p5 }
  0x49   : > { %p1874_p2 = pnand %p1873_p1, %p1867_p0 }
  0x4b   : > { %1877 = shalt.err (!%p1874_p2)
}
  0x4c   : > { %s2404_s17 = smov 64   ;;  %p2405_p3 = scmp.ne.s32.totalorder %s2398_s30, 0 }
  0x4d   : > { %1734 = dma.hbm_to_vmem [thread:$0]  (!%p2123_p13), %s2117_s10, 2048, %s2119_s24, %s2127_s11, %s2404_s17, %s2404_s17, %s1968_s25  }
  0x4e   : > { %312 = sbr.rel (%p2405_p3) target bundleno = 398 (0x18e), region = 40  ;;  %s2161_s12 = sand.u32 (!%p2405_p3), 1, %s1948_s19  }
  0x4f   : > { %s1435_s27 = sshll.u32 (!%p2405_p3), %s2161_s12, 7  ;;  %s315_s7 = scalar_lea.sflag (!%p2405_p3), [#allocation4], %s2161_s12 }
  0x50   : > { %s2167_s13 = scalar_lea.vmem (!%p2405_p3), [#allocation3], %s1435_s27  ;;  %p2406_p7 = scmp.ne.s32.totalorder (!%p2405_p3), %s2396_s28, 0 }
  0x55   : > { %1931 = dma.done.wait (%p2406_p7), %s315_s7, 2048  }
  0x56   : > { %1933 = vsyncadd (%p2406_p7), %s315_s7, 4294965248  ;;  %p2407_p13 = scmp.ne.s32.totalorder %s2394_s26, 0 }
  0x58   : > { %1935 = dma.done.wait (%p2407_p13), [#allocation7], 1024  }
  0x59   : > { %1937 = vsyncadd (%p2407_p13), [#allocation7], 4294966272  ;;  %v1796_v0 = vld [vmem:[#allocation6] sm:$0xff]   ;;  %v1797_v1 = vld [vmem:[#allocation6 + $0x8] sm:$0xff]   ;;  %s2238_s11 = scalar_lea.vmem [#allocation8], %s1435_s27  ;;  %s1535_s14 = sshll.u32 %s1956_s21, 11 }
  0x5a   : > { %1655 = vmatprep.subr.bf16.mxu0 %v1796_v0  ;;  %1703 = vmatprep.subr.bf16.mxu1 %v1796_v0  ;;  %v1798_v2 = vld [vmem:[#allocation6 + $0x10] sm:$0xff]   ;;  %v1799_v3 = vld [vmem:[#allocation6 + $0x18] sm:$0xff]   ;;  %v1804_v4 = vld [vmem:[%s2167_s13] sm:$0xff]   ;;  %s1267_s16 = sshll.u32 %s2238_s11, 4  ;;  %s2330_s27 = scalar_lea.hbm %s2388_s5, %s1535_s14  ;;  %s2332_s16 = int_to_ptr.vmem [resolvable:$true] %s1267_s16 }
  0x5b   : > { %1656 = vmatpush3.bf16.msra.mxu0 %v1796_v0  ;;  %1711 = vmatpush3.bf16.msra.mxu1 %v1796_v0  ;;  %v1805_v5 = vld [vmem:[%s2167_s13 + $0x40] sm:$0xff]   ;;  %v1801_v7 = vld [vmem:[#allocation6 + $0x28] sm:$0xff]   ;;  %v1802_v8 = vld [vmem:[#allocation6 + $0x30] sm:$0xff]   ;;  %s1251_s21 = scalar_lea.sflag [#allocation5], %s2161_s12  ;;  %s1878_s7 = scalar_lea.vmem %s2332_s16, 2048 }
  0x5c   : > { %1657 = vmatprep.subr.bf16.mxu0 %v1797_v1  ;;  %1704 = vmatprep.subr.bf16.mxu1 %v1797_v1  ;;  %v1800_v6 = vld [vmem:[#allocation6 + $0x20] sm:$0xff]   ;;  %v1803_v9 = vld [vmem:[#allocation6 + $0x38] sm:$0xff]   ;;  %v1806_v10 = vld [vmem:[%s2167_s13 + $0x8] sm:$0xff]   ;;  %p1879_p4 = scmp.ne.s32.totalorder %s2332_s16, %s1878_s7 }
  0x5d   : > { %1671 = vmatprep.mubr.bf16.mxu0 %v1804_v4  ;;  %1687 = vmatprep.mubr.bf16.mxu1 %v1805_v5  ;;  %v1807_v11 = vld [vmem:[%s2167_s13 + $0x48] sm:$0xff]   ;;  %v1808_v12 = vld [vmem:[%s2167_s13 + $0x10] sm:$0xff]   ;;  %v1810_v14 = vld [vmem:[%s2167_s13 + $0x18] sm:$0xff]  }
  0x5e   : > { %v1809_v13 = vld [vmem:[%s2167_s13 + $0x50] sm:$0xff]   ;;  %v1811_v15 = vld [vmem:[%s2167_s13 + $0x58] sm:$0xff]   ;;  %v1812_v16 = vld [vmem:[%s2167_s13 + $0x20] sm:$0xff]   ;;  %p1880_p6 = pnand %p1879_p4, %p2102_p10 }
  0x5f   : > { %1658 = vmatpush3.bf16.msra.mxu0 %v1797_v1  ;;  %1712 = vmatpush3.bf16.msra.mxu1 %v1797_v1  ;;  %v1813_v17 = vld [vmem:[%s2167_s13 + $0x60] sm:$0xff]   ;;  %v1814_v18 = vld [vmem:[%s2167_s13 + $0x28] sm:$0xff]   ;;  %v1816_v20 = vld [vmem:[%s2167_s13 + $0x30] sm:$0xff]  }
  0x60   : > { %1659 = vmatprep.subr.bf16.mxu0 %v1798_v2  ;;  %1705 = vmatprep.subr.bf16.mxu1 %v1798_v2  ;;  %v1815_v19 = vld [vmem:[%s2167_s13 + $0x68] sm:$0xff]   ;;  %v1817_v21 = vld [vmem:[%s2167_s13 + $0x70] sm:$0xff]   ;;  %v1818_v22 = vld [vmem:[%s2167_s13 + $0x38] sm:$0xff]   ;;  %p1881_p8 = pneg %p1880_p6 }
  0x61   : > { %v1819_v23 = vld [vmem:[%s2167_s13 + $0x78] sm:$0xff]   ;;  %v2196_v24 = vld [vmem:[%s2385_s2] ss:$0 sm:$0xff]  ;;  %s1970_s13 = smov [#allocation8]  }
  0x62   : > { %v2201_v26 = vld [vmem:[%s2386_s3] ss:$0 sm:$0xff]  ;;  %s1882_s26 = sshll.u32 %s1970_s13, 4  ;;  %s1883_s26 = int_to_ptr.vmem [resolvable:$false] %s1882_s26 }
  0x63   : > { %1660 = vmatpush3.bf16.msra.mxu0 %v1798_v2  ;;  %1713 = vmatpush3.bf16.msra.mxu1 %v1798_v2  ;;  %v2208_v32 = vld [vmem:[%s2387_s4] ss:$0 sm:$0xff]  ;;  %s1884_s28 = scalar_lea.vmem %s1883_s26, 4096  ;;  %p1885_p12 = scmp.lt.s32.totalorder %s2332_s16, %s1883_s26 }
  0x64   : > { %1661 = vmatprep.subr.bf16.mxu0 %v1799_v3  ;;  %1706 = vmatprep.subr.bf16.mxu1 %v1799_v3  ;;  %p1886_p11 = scmp.lt.s32.totalorder %s1884_s28, %s1878_s7 }
  0x66   : > { %p1887_p0 = por %p1886_p11, %p1885_p12 }
  0x67   : > { %1662 = vmatpush3.bf16.msra.mxu0 %v1799_v3  ;;  %1714 = vmatpush3.bf16.msra.mxu1 %v1799_v3 }
  0x68   : > { %1663 = vmatprep.subr.bf16.mxu0 %v1800_v6  ;;  %1707 = vmatprep.subr.bf16.mxu1 %v1800_v6  ;;  %p1888_p5 = pnand %p1887_p0, %p1881_p8 }
  0x6b   : > { %1664 = vmatpush3.bf16.msra.mxu0 %v1800_v6  ;;  %1715 = vmatpush3.bf16.msra.mxu1 %v1800_v6 }
  0x6c   : > { %1665 = vmatprep.subr.bf16.mxu0 %v1801_v7  ;;  %1708 = vmatprep.subr.bf16.mxu1 %v1801_v7 }
  0x6f   : > { %1666 = vmatpush3.bf16.msra.mxu0 %v1801_v7  ;;  %1716 = vmatpush3.bf16.msra.mxu1 %v1801_v7 }
  0x70   : > { %1667 = vmatprep.subr.bf16.mxu0 %v1802_v8  ;;  %1709 = vmatprep.subr.bf16.mxu1 %v1802_v8 }
  0x73   : > { %1668 = vmatpush3.bf16.msra.mxu0 %v1802_v8  ;;  %1717 = vmatpush3.bf16.msra.mxu1 %v1802_v8 }
  0x74   : > { %1669 = vmatprep.subr.bf16.mxu0 %v1803_v9  ;;  %1710 = vmatprep.subr.bf16.mxu1 %v1803_v9 }
  0x77   : > { %1670 = vmatpush3.bf16.msra.mxu0 %v1803_v9  ;;  %1718 = vmatpush3.bf16.msra.mxu1 %v1803_v9 }
  0x7a   : > { %1672 = vmatmul.mubr.bf16.vlgmr.msra.gmra.mrb[0].mxu0 %v1806_v10  ;;  %1688 = vmatmul.mubr.bf16.vlgmr.msra.gmra.mrb[0].mxu1 %v1807_v11 }
  0x7b   : > { %1675 = vmatprep.mubr.bf16.mxu0 %v1808_v12  ;;  %1691 = vmatprep.mubr.bf16.mxu1 %v1809_v13 }
  0x82   : > { %1676 = vmatmul.mubr.bf16.gmra.mrb[4].mxu0 %v1810_v14  ;;  %1692 = vmatmul.mubr.bf16.gmra.mrb[4].mxu1 %v1811_v15 }
  0x83   : > { %1679 = vmatprep.mubr.bf16.mxu0 %v1812_v16  ;;  %1695 = vmatprep.mubr.bf16.mxu1 %v1813_v17 }
  0x8a   : > { %1680 = vmatmul.mubr.bf16.gmra.mrb[8].mxu0 %v1814_v18  ;;  %1696 = vmatmul.mubr.bf16.gmra.mrb[8].mxu1 %v1815_v19 }
  0x8b   : > { %1683 = vmatprep.mubr.bf16.mxu0 %v1816_v20  ;;  %1699 = vmatprep.mubr.bf16.mxu1 %v1817_v21 }
  0x92   : > { %1684 = vmatmul.mubr.bf16.gmra.mrb[12].mxu0 %v1818_v22  ;;  %1700 = vmatmul.mubr.bf16.gmra.mrb[12].mxu1 %v1819_v23 }
 0x14d   : > { %v1673_v25 = vpop.f32.mrb[0].mxu0  ;;  %v1689_v27 = vpop.f32.mrb[0].mxu1 }
 0x14e   : > { %v918_v28 = vmul.f32 %v1673_v25, %v2196_v24  ;;  %v934_v29 = vmul.f32 %v1689_v27, %v2196_v24  ;;  %v683_v30 = vpop.f32.mrb[1].mxu0  ;;  %v747_v31 = vpop.f32.mrb[1].mxu1 }
 0x14f   : > { %v916_v33 = vmul.f32 %v2196_v24, %v683_v30  ;;  %v932_v34 = vmul.f32 %v2196_v24, %v747_v31  ;;  %v1674_v35 = vpop.f32.mrb[2].mxu0  ;;  %v1690_v36 = vpop.f32.mrb[2].mxu1 }
 0x150   : > { %v957_v37 = vadd.f32 %v2201_v26, %v918_v28  ;;  %v973_v38 = vadd.f32 %v2201_v26, %v934_v29  ;;  %v919_v39 = vmul.f32 %v1674_v35, %v2196_v24  ;;  %v935_v40 = vmul.f32 %v1690_v36, %v2196_v24  ;;  %v686_v41 = vpop.f32.mrb[3].mxu0  ;;  %v750_v42 = vpop.f32.mrb[3].mxu1 }
 0x151   : > { %v955_v43 = vadd.f32 %v2201_v26, %v916_v33  ;;  %v971_v44 = vadd.f32 %v2201_v26, %v932_v34  ;;  %v917_v45 = vmul.f32 %v2196_v24, %v686_v41  ;;  %v933_v46 = vmul.f32 %v2196_v24, %v750_v42 }
 0x152   : > { %vm989_vm0 = vcmp.ge.f32.partialorder %v957_v37, 0.0  ;;  %v1028_v47 = vmul.f32 %v2208_v32, %v957_v37  ;;  %vm1005_vm1 = vcmp.ge.f32.partialorder %v973_v38, 0.0  ;;  %v1044_v48 = vmul.f32 %v2208_v32, %v973_v38 }
 0x153   : > { %vm987_vm2 = vcmp.ge.f32.partialorder %v955_v43, 0.0  ;;  %v1026_v49 = vmul.f32 %v2208_v32, %v955_v43  ;;  %vm1003_vm3 = vcmp.ge.f32.partialorder %v971_v44, 0.0  ;;  %v1042_v50 = vmul.f32 %v2208_v32, %v971_v44 }
 0x154   : > { %v1060_v51 = vsel %vm989_vm0, %v957_v37, %v1028_v47  ;;  %v1076_v52 = vsel %vm1005_vm1, %v973_v38, %v1044_v48  ;;  %v958_v53 = vadd.f32 %v2201_v26, %v919_v39  ;;  %v974_v54 = vadd.f32 %v2201_v26, %v935_v40 }
 0x155   : > { %v1058_v55 = vsel %vm987_vm2, %v955_v43, %v1026_v49  ;;  %v1074_v56 = vsel %vm1003_vm3, %v971_v44, %v1042_v50  ;;  %v956_v57 = vadd.f32 %v2201_v26, %v917_v45  ;;  %v972_v58 = vadd.f32 %v2201_v26, %v933_v46  ;;  %v1677_v59 = vpop.f32.mrb[4].mxu0  ;;  %v1693_v60 = vpop.f32.mrb[4].mxu1 }
 0x156   : > { %vm990_vm4 = vcmp.ge.f32.partialorder %v958_v53, 0.0  ;;  %v1029_v61 = vmul.f32 %v2208_v32, %v958_v53  ;;  %vm1006_vm5 = vcmp.ge.f32.partialorder %v974_v54, 0.0  ;;  %v1045_v62 = vmul.f32 %v2208_v32, %v974_v54  ;;  %v699_v63 = vpop.f32.mrb[5].mxu0  ;;  %v763_v0 = vpop.f32.mrb[5].mxu1 }
 0x157   : > { %vm988_vm6 = vcmp.ge.f32.partialorder %v956_v57, 0.0  ;;  %v1027_v1 = vmul.f32 %v2208_v32, %v956_v57  ;;  %vm1004_vm7 = vcmp.ge.f32.partialorder %v972_v58, 0.0  ;;  %v1043_v2 = vmul.f32 %v2208_v32, %v972_v58  ;;  %v1678_v3 = vpop.f32.mrb[6].mxu0  ;;  %v1694_v4 = vpop.f32.mrb[6].mxu1 }
 0x158   : > { %v1061_v5 = vsel %vm990_vm4, %v958_v53, %v1029_v61  ;;  %v1077_v6 = vsel %vm1006_vm5, %v974_v54, %v1045_v62  ;;  %v922_v7 = vmul.f32 %v1677_v59, %v2196_v24  ;;  %v938_v8 = vmul.f32 %v1693_v60, %v2196_v24  ;;  %v702_v9 = vpop.f32.mrb[7].mxu0  ;;  %v766_v10 = vpop.f32.mrb[7].mxu1 }
 0x159   : > { %v1544_v11 = vpack.c.bf16 %v1061_v5, %v1060_v51  ;;  %v1584_v12 = vpack.c.bf16 %v1077_v6, %v1076_v52  ;;  %v1059_v13 = vsel %vm988_vm6, %v956_v57, %v1027_v1  ;;  %v1075_v14 = vsel %vm1004_vm7, %v972_v58, %v1043_v2 }
 0x15a   : > { %v1539_v15 = vpack.c.bf16 %v1059_v13, %v1058_v55  ;;  %v1579_v16 = vpack.c.bf16 %v1075_v14, %v1074_v56  ;;  %v961_v17 = vadd.f32 %v2201_v26, %v922_v7  ;;  %v977_v18 = vadd.f32 %v2201_v26, %v938_v8 }
 0x15b   : > { %1616 = vst [vmem:[%s2238_s11 + $0x8] sm:$0xff] %v1544_v11   ;;  %1624 = vst [vmem:[%s2238_s11 + $0x48] sm:$0xff] %v1584_v12   ;;  %v920_v19 = vmul.f32 %v2196_v24, %v699_v63  ;;  %v936_v20 = vmul.f32 %v2196_v24, %v763_v0  ;;  %v923_v21 = vmul.f32 %v1678_v3, %v2196_v24 }
 0x15c   : > { %v939_v22 = vmul.f32 %v1694_v4, %v2196_v24  ;;  %1540 = vst [vmem:[%s2238_s11] sm:$0xff] %v1539_v15   ;;  %1623 = vst [vmem:[%s2238_s11 + $0x40] sm:$0xff] %v1579_v16   ;;  %vm993_vm8 = vcmp.ge.f32.partialorder %v961_v17, 0.0  ;;  %v1032_v23 = vmul.f32 %v2208_v32, %v961_v17  ;;  %vm1009_vm9 = vcmp.ge.f32.partialorder %v977_v18, 0.0 }
 0x15d   : > { %v1048_v25 = vmul.f32 %v2208_v32, %v977_v18  ;;  %v959_v27 = vadd.f32 %v2201_v26, %v920_v19  ;;  %v975_v28 = vadd.f32 %v2201_v26, %v936_v20  ;;  %v962_v29 = vadd.f32 %v2201_v26, %v923_v21  ;;  %v1681_v31 = vpop.f32.mrb[8].mxu0  ;;  %v1697_v33 = vpop.f32.mrb[8].mxu1 }
 0x15e   : > { %v978_v30 = vadd.f32 %v2201_v26, %v939_v22  ;;  %v1064_v34 = vsel %vm993_vm8, %v961_v17, %v1032_v23  ;;  %v921_v36 = vmul.f32 %v2196_v24, %v702_v9  ;;  %v937_v37 = vmul.f32 %v2196_v24, %v766_v10  ;;  %v715_v38 = vpop.f32.mrb[9].mxu0  ;;  %v779_v39 = vpop.f32.mrb[9].mxu1 }
 0x15f   : > { %v1080_v35 = vsel %vm1009_vm9, %v977_v18, %v1048_v25  ;;  %vm991_vm10 = vcmp.ge.f32.partialorder %v959_v27, 0.0  ;;  %v1030_v40 = vmul.f32 %v2208_v32, %v959_v27  ;;  %vm1007_vm11 = vcmp.ge.f32.partialorder %v975_v28, 0.0  ;;  %v1682_v42 = vpop.f32.mrb[10].mxu0  ;;  %v1698_v43 = vpop.f32.mrb[10].mxu1 }
 0x160   : > { %v1046_v41 = vmul.f32 %v2208_v32, %v975_v28  ;;  %vm994_vm12 = vcmp.ge.f32.partialorder %v962_v29, 0.0  ;;  %v1033_v44 = vmul.f32 %v2208_v32, %v962_v29  ;;  %vm1010_vm13 = vcmp.ge.f32.partialorder %v978_v30, 0.0  ;;  %v718_v46 = vpop.f32.mrb[11].mxu0  ;;  %v782_v47 = vpop.f32.mrb[11].mxu1 }
 0x161   : > { %v1049_v45 = vmul.f32 %v2208_v32, %v978_v30  ;;  %v1062_v48 = vsel %vm991_vm10, %v959_v27, %v1030_v40  ;;  %v960_v50 = vadd.f32 %v2201_v26, %v921_v36  ;;  %v976_v51 = vadd.f32 %v2201_v26, %v937_v37 }
 0x162   : > { %v1078_v49 = vsel %vm1007_vm11, %v975_v28, %v1046_v41  ;;  %v1065_v52 = vsel %vm994_vm12, %v962_v29, %v1033_v44  ;;  %v926_v54 = vmul.f32 %v1681_v31, %v2196_v24  ;;  %v942_v55 = vmul.f32 %v1697_v33, %v2196_v24 }
 0x163   : > { %v1081_v53 = vsel %vm1010_vm13, %v978_v30, %v1049_v45  ;;  %v1554_v56 = vpack.c.bf16 %v1065_v52, %v1064_v34  ;;  %vm992_vm14 = vcmp.ge.f32.partialorder %v960_v50, 0.0  ;;  %v1031_v58 = vmul.f32 %v2208_v32, %v960_v50 }
 0x164   : > { %v1594_v57 = vpack.c.bf16 %v1081_v53, %v1080_v35  ;;  %vm1008_vm15 = vcmp.ge.f32.partialorder %v976_v51, 0.0  ;;  %v1047_v59 = vmul.f32 %v2208_v32, %v976_v51  ;;  %v965_v60 = vadd.f32 %v2201_v26, %v926_v54 }
 0x165   : > { %v981_v61 = vadd.f32 %v2201_v26, %v942_v55  ;;  %1618 = vst [vmem:[%s2238_s11 + $0x18] sm:$0xff] %v1554_v56   ;;  %v1063_v62 = vsel %vm992_vm14, %v960_v50, %v1031_v58  ;;  %v924_v63 = vmul.f32 %v2196_v24, %v715_v38  ;;  %v940_v0 = vmul.f32 %v2196_v24, %v779_v39  ;;  %v1685_v2 = vpop.f32.mrb[12].mxu0  ;;  %v1701_v3 = vpop.f32.mrb[12].mxu1 }
 0x166   : > { %1626 = vst [vmem:[%s2238_s11 + $0x58] sm:$0xff] %v1594_v57   ;;  %v927_v1 = vmul.f32 %v1682_v42, %v2196_v24  ;;  %v1549_v4 = vpack.c.bf16 %v1063_v62, %v1062_v48  ;;  %v1079_v5 = vsel %vm1008_vm15, %v976_v51, %v1047_v59  ;;  %vm997_vm0 = vcmp.ge.f32.partialorder %v965_v60, 0.0  ;;  %v731_v7 = vpop.f32.mrb[13].mxu0  ;;  %v795_v8 = vpop.f32.mrb[13].mxu1 }
 0x167   : > { %v1036_v6 = vmul.f32 %v2208_v32, %v965_v60  ;;  %v1589_v9 = vpack.c.bf16 %v1079_v5, %v1078_v49  ;;  %vm1013_vm1 = vcmp.ge.f32.partialorder %v981_v61, 0.0  ;;  %v1052_v10 = vmul.f32 %v2208_v32, %v981_v61  ;;  %v1686_v12 = vpop.f32.mrb[14].mxu0  ;;  %v1702_v13 = vpop.f32.mrb[14].mxu1 }
 0x168   : > { %v963_v11 = vadd.f32 %v2201_v26, %v924_v63  ;;  %1617 = vst [vmem:[%s2238_s11 + $0x10] sm:$0xff] %v1549_v4   ;;  %v979_v14 = vadd.f32 %v2201_v26, %v940_v0  ;;  %v966_v15 = vadd.f32 %v2201_v26, %v927_v1  ;;  %v943_v16 = vmul.f32 %v1698_v43, %v2196_v24  ;;  %v734_v17 = vpop.f32.mrb[15].mxu0  ;;  %v798_v18 = vpop.f32.mrb[15].mxu1 }
 0x169   : > { %1625 = vst [vmem:[%s2238_s11 + $0x50] sm:$0xff] %v1589_v9   ;;  %v1068_v19 = vsel %vm997_vm0, %v965_v60, %v1036_v6  ;;  %v1084_v20 = vsel %vm1013_vm1, %v981_v61, %v1052_v10  ;;  %v925_v21 = vmul.f32 %v2196_v24, %v718_v46  ;;  %v941_v28 = vmul.f32 %v2196_v24, %v782_v47 }
 0x16a   : > { %vm995_vm2 = vcmp.ge.f32.partialorder %v963_v11, 0.0  ;;  %v1034_v22 = vmul.f32 %v2208_v32, %v963_v11  ;;  %vm998_vm3 = vcmp.ge.f32.partialorder %v966_v15, 0.0  ;;  %v1037_v23 = vmul.f32 %v2208_v32, %v966_v15 }
 0x16b   : > { %vm1011_vm4 = vcmp.ge.f32.partialorder %v979_v14, 0.0  ;;  %v982_v25 = vadd.f32 %v2201_v26, %v943_v16  ;;  %v964_v27 = vadd.f32 %v2201_v26, %v925_v21  ;;  %v1050_v29 = vmul.f32 %v2208_v32, %v979_v14 }
 0x16c   : > { %v1069_v30 = vsel %vm998_vm3, %v966_v15, %v1037_v23  ;;  %v930_v31 = vmul.f32 %v1685_v2, %v2196_v24  ;;  %v946_v33 = vmul.f32 %v1701_v3, %v2196_v24  ;;  %v1066_v36 = vsel %vm995_vm2, %v963_v11, %v1034_v22 }
 0x16d   : > { %v1564_v34 = vpack.c.bf16 %v1069_v30, %v1068_v19  ;;  %vm1014_vm5 = vcmp.ge.f32.partialorder %v982_v25, 0.0  ;;  %v1053_v35 = vmul.f32 %v2208_v32, %v982_v25  ;;  %vm996_vm6 = vcmp.ge.f32.partialorder %v964_v27, 0.0 }
 0x16e   : > { %v1035_v37 = vmul.f32 %v2208_v32, %v964_v27  ;;  %v980_v38 = vadd.f32 %v2201_v26, %v941_v28  ;;  %v969_v39 = vadd.f32 %v2201_v26, %v930_v31  ;;  %v985_v41 = vadd.f32 %v2201_v26, %v946_v33 }
 0x16f   : > { %1620 = vst [vmem:[%s2238_s11 + $0x28] sm:$0xff] %v1564_v34   ;;  %v1085_v40 = vsel %vm1014_vm5, %v982_v25, %v1053_v35  ;;  %v928_v42 = vmul.f32 %v2196_v24, %v731_v7  ;;  %v931_v43 = vmul.f32 %v1686_v12, %v2196_v24  ;;  %v944_v48 = vmul.f32 %v2196_v24, %v795_v8 }
 0x170   : > { %v1604_v44 = vpack.c.bf16 %v1085_v40, %v1084_v20  ;;  %v1067_v45 = vsel %vm996_vm6, %v964_v27, %v1035_v37  ;;  %vm1012_vm7 = vcmp.ge.f32.partialorder %v980_v38, 0.0  ;;  %v1051_v46 = vmul.f32 %v2208_v32, %v980_v38 }
 0x171   : > { %v1559_v47 = vpack.c.bf16 %v1067_v45, %v1066_v36  ;;  %v1082_v49 = vsel %vm1011_vm4, %v979_v14, %v1050_v29  ;;  %vm1001_vm8 = vcmp.ge.f32.partialorder %v969_v39, 0.0  ;;  %v1040_v51 = vmul.f32 %v2208_v32, %v969_v39 }
 0x172   : > { %1628 = vst [vmem:[%s2238_s11 + $0x68] sm:$0xff] %v1604_v44   ;;  %v1083_v50 = vsel %vm1012_vm7, %v980_v38, %v1051_v46  ;;  %v1056_v53 = vmul.f32 %v2208_v32, %v985_v41  ;;  %v970_v54 = vadd.f32 %v2201_v26, %v931_v43  ;;  %v947_v55 = vmul.f32 %v1702_v13, %v2196_v24 }
 0x173   : > { %1619 = vst [vmem:[%s2238_s11 + $0x20] sm:$0xff] %v1559_v47   ;;  %v1599_v52 = vpack.c.bf16 %v1083_v50, %v1082_v49  ;;  %vm1017_vm9 = vcmp.ge.f32.partialorder %v985_v41, 0.0  ;;  %v967_v56 = vadd.f32 %v2201_v26, %v928_v42  ;;  %v983_v57 = vadd.f32 %v2201_v26, %v944_v48 }
 0x174   : > { %vm1002_vm10 = vcmp.ge.f32.partialorder %v970_v54, 0.0  ;;  %v1041_v58 = vmul.f32 %v2208_v32, %v970_v54  ;;  %v986_v59 = vadd.f32 %v2201_v26, %v947_v55  ;;  %v1072_v60 = vsel %vm1001_vm8, %v969_v39, %v1040_v51 }
 0x175   : > { %1627 = vst [vmem:[%s2238_s11 + $0x60] sm:$0xff] %v1599_v52   ;;  %v929_v61 = vmul.f32 %v2196_v24, %v734_v17  ;;  %v945_v62 = vmul.f32 %v2196_v24, %v798_v18  ;;  %v1088_v63 = vsel %vm1017_vm9, %v985_v41, %v1056_v53  ;;  %v1038_v2 = vmul.f32 %v2208_v32, %v967_v56 }
 0x176   : > { %v1073_v0 = vsel %vm1002_vm10, %v970_v54, %v1041_v58  ;;  %vm1018_vm11 = vcmp.ge.f32.partialorder %v986_v59, 0.0  ;;  %v1057_v1 = vmul.f32 %v2208_v32, %v986_v59  ;;  %vm999_vm12 = vcmp.ge.f32.partialorder %v967_v56, 0.0 }
 0x177   : > { %v1574_v3 = vpack.c.bf16 %v1073_v0, %v1072_v60  ;;  %v968_v4 = vadd.f32 %v2201_v26, %v929_v61  ;;  %v984_v5 = vadd.f32 %v2201_v26, %v945_v62  ;;  %vm1015_vm13 = vcmp.ge.f32.partialorder %v983_v57, 0.0 }
 0x178   : > { %v1054_v6 = vmul.f32 %v2208_v32, %v983_v57  ;;  %v1089_v24 = vsel %vm1018_vm11, %v986_v59, %v1057_v1  ;;  %v1070_v26 = vsel %vm999_vm12, %v967_v56, %v1038_v2 }
 0x179   : > { %1622 = vst [vmem:[%s2238_s11 + $0x38] sm:$0xff] %v1574_v3   ;;  %v1614_v7 = vpack.c.bf16 %v1089_v24, %v1088_v63  ;;  %vm1000_vm14 = vcmp.ge.f32.partialorder %v968_v4, 0.0  ;;  %v1039_v8 = vmul.f32 %v2208_v32, %v968_v4  ;;  %vm1016_vm15 = vcmp.ge.f32.partialorder %v984_v5, 0.0 }
 0x17a   : > { %v1055_v9 = vmul.f32 %v2208_v32, %v984_v5  ;;  %v1086_v11 = vsel %vm1015_vm13, %v983_v57, %v1054_v6 }
 0x17b   : > { %1630 = vst [vmem:[%s2238_s11 + $0x78] sm:$0xff] %v1614_v7   ;;  %v1071_v10 = vsel %vm1000_vm14, %v968_v4, %v1039_v8 }
 0x17c   : > { %v1569_v12 = vpack.c.bf16 %v1071_v10, %v1070_v26  ;;  %v1087_v13 = vsel %vm1016_vm15, %v984_v5, %v1055_v9 }
 0x17d   : > { %v1609_v14 = vpack.c.bf16 %v1087_v13, %v1086_v11 }
 0x17e   : > { %1621 = vst [vmem:[%s2238_s11 + $0x30] sm:$0xff] %v1569_v12  }
 0x17f   : > { %1629 = vst [vmem:[%s2238_s11 + $0x70] sm:$0xff] %v1609_v14  }
 0x180   : > { %1891 = shalt.err (!%p1888_p5)
}
 0x181   : > { %s1892_s30 = scalar_lea.hbm %s2330_s27, 2048  ;;  %s1896_s10 = scalar_lea.hbm %s2388_s5, 4096 }
 0x182   : > { %p1893_p9 = scmp.ne.s32.totalorder %s2330_s27, %s1892_s30  ;;  %p1897_p3 = scmp.lt.u32.totalorder %s2330_s27, %s2388_s5 }
 0x183   : > { %p1898_p7 = scmp.lt.u32.totalorder %s1896_s10, %s1892_s30  ;;  %p1900_p4 = scmp.lt.u32.totalorder %s1892_s30, %s2330_s27 }
 0x184   : > { %p1894_p1 = pnand %p1893_p9, %p2102_p10 }
 0x185   : > { %p1899_p13 = por %p1898_p7, %p1897_p3 }
 0x186   : > { %p1895_p2 = pneg %p1894_p1 }
 0x187   : > { %p1901_p6 = por %p1900_p4, %p1899_p13 }
 0x189   : > { %p1902_p8 = pnand %p1901_p6, %p1895_p2 }
 0x18b   : > { %1905 = shalt.err (!%p1902_p8)
}
 0x18c   : > { %s1971_s6 = smov 64   ;;  %s1972_s17 = smov 4  }
 0x18d   : > { %1725 = dma.vmem_to_hbm [thread:$0]  (%p2102_p10), %s2332_s16, 2048, %s2330_s27, %s1251_s21, %s1971_s6, %s1971_s6, %s1972_s17  }
 0x18e PF: > { %s1282_s7 = sand.u32 1, %s1944_s18   ;;  %p2408_p12 = scmp.ne.s32.totalorder %s2397_s29, 0 }
 0x18f   : > { %p2409_p11 = scmp.ge.s32.totalorder %s1964_s23, 2  ;;  %s1283_s13 = scalar_lea.sflag [#allocation5], %s1282_s7 }
 0x191   : > { %p1736_p0 = pnand %p2409_p11, %p2408_p12 }
 0x193   : > { %1939 = dma.done.wait (!%p1736_p0), %s1283_s13, 2048  }
 0x194   : > { %1941 = vsyncadd (!%p1736_p0), %s1283_s13, 4294965248  ;;  %s22_s23 = sadd.s32 1, %s1964_s23   ;;  %s2410_s18 = smov %s1948_s19 }
 0x195   : > { %p19_p5 = scmp.ge.s32.totalorder %s22_s23, 4   ;;  %s2411_s19 = smov %s1952_s20 }
 0x196   : > { %s2412_s20 = smov %s2111_s15  ;;  %s2413_s21 = smov %s1960_s22 }
 0x197   : > { %s2414_s22 = smov %s2416_s9  ;;  %21 = sbr.rel (!%p19_p5) target bundleno = 7 (0x7), region = 107 }
 0x19e   :  { %1288 = vsyncpa [#allocation4], 1 }
 0x19f   :  { %1290 = vsyncpa [#allocation4 + $0x1], 1 }
 0x1a0   :  { %1291 = vsyncpa [#allocation7], 1 }
 0x1a1   :  { %1292 = vsyncpa [#allocation5], 1 }
 0x1a2   :  { %1294 = vsyncpa [#allocation5 + $0x1], 1 }

</bundles_post_ra>
